<compile_context>
chip_gen: v5e
topology: v5e:2x2
jax: 0.10.0
libtpu: 0.0.40
codegen_flags: <defaults>
</compile_context>

<pallas_src>
import functools
import math

import jax
import jax.numpy as jnp
from jax.experimental import pallas as pl
from jax.experimental.pallas import tpu as pltpu


H = 64            # spatial size fixed by the fc layer (channel_2 * 64 * 64)
W = 64
PADH = 72         # H + slack rows (>= 2*max_pad), multiple of 8 (sublane tile)
PADW = 128        # W padded up to a full lane width


# ---------------------------------------------------------------------------
# pltpu.roll semantics guard: probe once on-device so a direction mismatch can
# never silently corrupt the conv taps (we expect jnp.roll semantics).
# ---------------------------------------------------------------------------
_ROLL_LIKE_JNP = None


def _roll_is_like_jnp():
    global _ROLL_LIKE_JNP
    if _ROLL_LIKE_JNP is None:
        def probe(x_ref, o_ref):
            o_ref[...] = pltpu.roll(x_ref[...], shift=1, axis=1)

        x = jnp.broadcast_to(jnp.arange(128, dtype=jnp.float32), (8, 128))
        y = pl.pallas_call(
            probe, out_shape=jax.ShapeDtypeStruct((8, 128), jnp.float32))(x)
        _ROLL_LIKE_JNP = bool(y[0, 1] == x[0, 0])
    return _ROLL_LIKE_JNP


def _rot_read(x, d, axis, size, roll_like_jnp):
    """y[..., j, ...] = x[..., (j + d) % size, ...] along `axis` (static d)."""
    if d % size == 0:
        return x
    shift = (-d) % size if roll_like_jnp else d % size
    return pltpu.roll(x, shift=shift, axis=axis)


# ---------------------------------------------------------------------------
# Fused kernel
# ---------------------------------------------------------------------------
def _conv_taps(in_ref, n_in, w_ref, ksize, pad, n_out, roll_like_jnp):
    """Direct VPU convolution over zero-slack padded channel planes.

    in_ref : VMEM ref (n_in, PADH, PADW); data in [0:H, 0:W], zeros elsewhere.
    w_ref  : SMEM ref, flat (n_out*n_in*ksize*ksize,), PyTorch OIHW order.
    Returns n_out accumulators of shape (H, PADW) (only [:, :W] is valid).
    """
    accs = [jnp.zeros((H, PADW), jnp.float32) for _ in range(n_out)]
    for ci in range(n_in):
        plane = in_ref[ci]                                        # (PADH, PADW)
        for ky in range(ksize):
            rows = _rot_read(plane, ky - pad, 0, PADH, roll_like_jnp)[0:H, :]
            for kx in range(ksize):
                win = _rot_read(rows, kx - pad, 1, PADW, roll_like_jnp)
                for co in range(n_out):
                    wv = w_ref[((co * n_in + ci) * ksize + ky) * ksize + kx]
                    accs[co] = accs[co] + wv * win                # VPU FMA
    return accs


def _cnn_kernel(x_ref, w1_ref, b1_ref, w2_ref, b2_ref, wfc_ref, bfc_ref,
                o_ref, xpad_ref, h1pad_ref, *,
                cin, c1, c2, ncls, k1, p1, k2, p2, roll_like_jnp):
    # Stage this image's channels into the zero-slack padded scratch layout.
    xpad_ref[...] = jnp.zeros_like(xpad_ref)
    h1pad_ref[...] = jnp.zeros_like(h1pad_ref)
    for c in range(cin):
        xpad_ref[c, 0:H, 0:W] = x_ref[0, c]

    # conv1 (5x5, pad 2) + bias + ReLU -> padded scratch (input of conv2).
    acc1 = _conv_taps(xpad_ref, cin, w1_ref, k1, p1, c1, roll_like_jnp)
    for co in range(c1):
        h1pad_ref[co, 0:H, 0:W] = jnp.maximum(acc1[co][:, 0:W] + b1_ref[co], 0.0)

    # conv2 (3x3, pad 1) + bias + ReLU, kept as values.
    acc2 = _conv_taps(h1pad_ref, c1, w2_ref, k2, p2, c2, roll_like_jnp)
    h2 = [jnp.maximum(acc2[co][:, 0:W] + b2_ref[co], 0.0) for co in range(c2)]

    # Flatten (NCHW order) + fully connected layer, one class at a time.
    lane = jax.lax.broadcasted_iota(jnp.int32, (1, ncls), 1)
    out_row = jnp.zeros((1, ncls), jnp.float32)
    for j in range(ncls):
        r = jnp.zeros((H, W), jnp.float32)
        for c in range(c2):
            r = r + wfc_ref[j, c] * h2[c]
        s = jnp.sum(r, axis=1, keepdims=True)        # (H, 1)  lane reduce
        s = jnp.sum(s, axis=0, keepdims=True)        # (1, 1)  sublane reduce
        out_row = out_row + jnp.where(lane == j, s + bfc_ref[j], 0.0)
    o_ref[...] = out_row.reshape(1, 1, ncls)


# ---------------------------------------------------------------------------
# Wrapper
# ---------------------------------------------------------------------------
def cnn_images_forward(x, params):
    """Forward pass matching CNNImages.forward (NCHW input, PyTorch layouts)."""
    n, cin, hin, win_ = x.shape
    w1, b1 = params["w1"], params["b1"]
    w2, b2 = params["w2"], params["b2"]
    wf, bf = params["wf"], params["bf"]
    c1, _, k1, _ = w1.shape
    c2, _, k2, _ = w2.shape
    ncls = wf.shape[0]
    assert (hin, win_) == (H, W), "fc layer fixes the spatial size to 64x64"
    assert wf.shape[1] == c2 * H * W

    wfc4 = wf.reshape(ncls, c2, H, W)           # PyTorch flatten order (c, h, w)
    kern = functools.partial(
        _cnn_kernel, cin=cin, c1=c1, c2=c2, ncls=ncls,
        k1=k1, p1=k1 // 2, k2=k2, p2=k2 // 2,
        roll_like_jnp=_roll_is_like_jnp())

    smem = pl.BlockSpec(memory_space=pltpu.MemorySpace.SMEM)
    out = pl.pallas_call(
        kern,
        out_shape=jax.ShapeDtypeStruct((n, 1, ncls), jnp.float32),
        grid=(n,),
        in_specs=[
            pl.BlockSpec((1, cin, H, W), lambda i: (i, 0, 0, 0)),    # image i
            smem,                                                    # w1 (flat)
            smem,                                                    # b1
            smem,                                                    # w2 (flat)
            smem,                                                    # b2
            pl.BlockSpec((ncls, c2, H, W), lambda i: (0, 0, 0, 0)),  # fc weight (resident)
            smem,                                                    # fc bias
        ],
        out_specs=pl.BlockSpec((1, 1, ncls), lambda i: (i, 0, 0)),
        scratch_shapes=[
            pltpu.VMEM((cin, PADH, PADW), jnp.float32),   # padded conv1 input
            pltpu.VMEM((c1, PADH, PADW), jnp.float32),    # padded conv1 output
        ],
        compiler_params=pltpu.CompilerParams(
            dimension_semantics=("parallel",)),
    )(x, w1.reshape(-1), b1, w2.reshape(-1), b2, wfc4, bf)
    return out.reshape(n, ncls)


# ---------------------------------------------------------------------------
# Pure-JAX reference (f32 precision everywhere, like the kernel)
# ---------------------------------------------------------------------------
def reference_forward(x, params):
    dn = ("NCHW", "OIHW", "NCHW")
    hi = jax.lax.Precision.HIGHEST
    out = jax.lax.conv_general_dilated(
        x, params["w1"], (1, 1), [(2, 2), (2, 2)],
        dimension_numbers=dn, precision=hi)
    out = jax.nn.relu(out + params["b1"].reshape(1, -1, 1, 1))
    out = jax.lax.conv_general_dilated(
        out, params["w2"], (1, 1), [(1, 1), (1, 1)],
        dimension_numbers=dn, precision=hi)
    out = jax.nn.relu(out + params["b2"].reshape(1, -1, 1, 1))
    out = out.reshape(out.shape[0], -1)
    return jnp.dot(out, params["wf"].T, precision=hi) + params["bf"]


# ---------------------------------------------------------------------------
# Deterministic parameter init (kaiming-normal-like, PyTorch layouts)
# ---------------------------------------------------------------------------
def init_params(key, in_channel, channel_1, channel_2, num_classes):
    ks = jax.random.split(key, 6)
    fan1 = in_channel * 5 * 5
    fan2 = channel_1 * 3 * 3
    fanf = channel_2 * H * W
    return {
        "w1": jax.random.normal(ks[0], (channel_1, in_channel, 5, 5),
                                jnp.float32) * math.sqrt(2.0 / fan1),
        "b1": jax.random.uniform(ks[1], (channel_1,), jnp.float32,
                                 -1.0 / math.sqrt(fan1), 1.0 / math.sqrt(fan1)),
        "w2": jax.random.normal(ks[2], (channel_2, channel_1, 3, 3),
                                jnp.float32) * math.sqrt(2.0 / fan2),
        "b2": jax.random.uniform(ks[3], (channel_2,), jnp.float32,
                                 -1.0 / math.sqrt(fan2), 1.0 / math.sqrt(fan2)),
        "wf": jax.random.normal(ks[4], (num_classes, fanf),
                                jnp.float32) * math.sqrt(2.0 / fanf),
        "bf": jax.random.uniform(ks[5], (num_classes,), jnp.float32,
                                 -1.0 / math.sqrt(fanf), 1.0 / math.sqrt(fanf)),
    }


if __name__ == "__main__":
    # Small config; spatial must be 64x64 because fc expects channel_2*64*64.
    N, in_channel, channel_1, channel_2, num_classes = 2, 3, 4, 4, 10

    key = jax.random.PRNGKey(0)
    pkey, xkey = jax.random.split(key)
    params = init_params(pkey, in_channel, channel_1, channel_2, num_classes)
    x = jax.random.normal(xkey, (N, in_channel, 64, 64), jnp.float32)  # NCHW

    out = jax.block_until_ready(cnn_images_forward(x, params))
    ref = jax.block_until_ready(reference_forward(x, params))

    assert out.shape == (N, num_classes)
    assert jnp.allclose(out, ref, atol=1e-3, rtol=1e-3), "mismatch vs reference"

    print("KERNEL_OK")
</pallas_src>

<mosaic_0001>
module attributes {stable_mosaic.version = 11 : i64} {
  func.func @probe(%arg0: memref<8x128xf32, #tpu.memory_space<vmem>>, %arg1: memref<8x128xf32, #tpu.memory_space<vmem>>) attributes {dimension_semantics = [], scalar_prefetch = 0 : i64, scratch_operands = 0 : i64, tpu.core_type = #tpu.core_type<tc>} {
    %c0 = arith.constant 0 : index
    %c0_0 = arith.constant 0 : index
    %0 = vector.load %arg0[%c0, %c0_0] : memref<8x128xf32, #tpu.memory_space<vmem>>, vector<8x128xf32>
    %c1_i32 = arith.constant 1 : i32
    %1 = tpu.dynamic_rotate %0 by %c1_i32 dim 1 : vector<8x128xf32>, i32 -> vector<8x128xf32>
    %c0_1 = arith.constant 0 : index
    %c0_2 = arith.constant 0 : index
    %2 = vector.load %arg1[%c0_1, %c0_2] : memref<8x128xf32, #tpu.memory_space<vmem>>, vector<8x128xf32>
    tpu.vector_store %arg1[%c0_1, %c0_2], %1 {strides = array<i32>} : memref<8x128xf32, #tpu.memory_space<vmem>>, vector<8x128xf32>,
    return
  }
}

</mosaic_0001>

<bundles_post_ra>
// kernel: tpu_custom_call.1
= control target key start
LH: loop header
LB: loop body
LE: loop exit
PB: predicated region body
PF: predicated region fallthrough
CT: control target
= control target key end

     0   :  { %6 = vsyncpa [#allocation3], 0  ;;  %s118_s0 = inlined_call_operand.hbm [shape: f32[8,128], index: 0, kind: input, shape index: {}]   ;;  %s119_s1 = inlined_call_operand.hbm [shape: f32[8,128], index: 1, kind: output, shape index: {}]  }
   0x1   :  { %7 = vsyncpa [#allocation4], 0  ;;  %s13_s8 = sshll.u32 %s118_s0, 4  ;;  %s99_s9 = smov [#allocation2]   ;;  %s14_s8 = int_to_ptr.hbm [resolvable:$true] %s13_s8 }
   0x2   :  { %s15_s10 = sshll.u32 %s99_s9, 4  ;;  %s16_s10 = int_to_ptr.vmem [resolvable:$true] %s15_s10 }
   0x3   :  { %18 = dma.hbm_to_vmem [thread:$0]  %s14_s8, 128, %s16_s10, [#allocation3]  }
   0x4   :  { %95 = dma.done.wait [#allocation3], 128  }
   0x5   :  { %96 = vsyncadd [#allocation3], 4294967168  ;;  %v23_v0 = vld [vmem:[#allocation2] sm:$0xff]  ;;  %s100_s11 = smov 1   ;;  %s101_s12 = smov [#allocation5]  }
   0x6   :  { %24 = vrot.lane.b32.xlu0 %v23_v0, %s100_s11  ;;  %s32_s13 = sshll.u32 %s101_s12, 4  ;;  %s34_s16 = sshll.u32 %s119_s1, 4  ;;  %s33_s13 = int_to_ptr.vmem [resolvable:$true] %s32_s13  ;;  %s35_s16 = int_to_ptr.hbm [resolvable:$true] %s34_s16 }
  0x78   :  { %v25_v1 = vpop.permute.xlu0 %24 }
  0x79   :  { %26 = vst [vmem:[#allocation5] sm:$0xff] %v25_v1 }
  0x7a   :  { %37 = dma.vmem_to_hbm [thread:$0]  %s33_s13, 128, %s35_s16, [#allocation4]  }
  0x7b   :  { %97 = dma.done.wait [#allocation4], 128  }
  0x7c   :  { %98 = vsyncadd [#allocation4], 4294967168 }
  0x7d   :  { %42 = vsyncpa [#allocation3], 1 }
  0x7e   :  { %43 = vsyncpa [#allocation4], 1 }

</bundles_post_ra>
